<compile_context>
chip_gen: v7x
topology: tpu7x:2x2x1
jax: 0.10.0
libtpu: 0.0.40
codegen_flags: <defaults>
</compile_context>

<pallas_src>
import functools

import jax
import jax.numpy as jnp
from jax.experimental import pallas as pl
from jax.experimental.pallas import tpu as pltpu


def _cross_attn_kernel(x_ref, ctx_ref, bias_ref,
                       ln_g_ref, ln_b_ref,
                       wq_ref, wk_ref, wv_ref, wo_ref, bo_ref,
                       out_ref,
                       k_sc, v_sc, q_sc, o_sc,
                       *, num_heads, eps):
    # x_ref:    (1, TQ, D)    current (batch, query-tile) block
    # ctx_ref:  (1, M, D)     full context for this batch (DMA'd once per batch)
    # bias_ref: (1, H, TQ, M) relative position bias, native dtype
    # wq/wk/wv/wo: (D, D) bf16 full-width weights (softmax scale folded into Wq)
    # k_sc/v_sc: (H, M, d) bf16 scratch — per-batch K/V cache
    # q_sc:      (H, TQ, d) bf16 scratch — per-tile head-split Q
    # o_sc:      (TQ, D) bf16 scratch — lane-dense merged attention output
    H = num_heads
    d = k_sc.shape[-1]
    qi = pl.program_id(1)

    g = ln_g_ref[...].astype(jnp.float32)        # (1, D)
    beta = ln_b_ref[...].astype(jnp.float32)     # (1, D)

    def layernorm(t):
        mu = jnp.mean(t, axis=-1, keepdims=True)
        var = jnp.mean(jnp.square(t - mu), axis=-1, keepdims=True)
        return (t - mu) * jax.lax.rsqrt(var + eps) * g + beta

    # ---- K/V: computed once per batch (first query tile), cached in VMEM ----
    @pl.when(qi == 0)
    def _():
        c = ctx_ref[0].astype(jnp.float32)                         # (M, D)
        cn = layernorm(c).astype(jnp.bfloat16)                     # (M, D)
        # Full-width lane-dense projections (f32 accumulation on the MXU).
        k_flat = jnp.dot(cn, wk_ref[...],
                         preferred_element_type=jnp.float32).astype(jnp.bfloat16)
        v_flat = jnp.dot(cn, wv_ref[...],
                         preferred_element_type=jnp.float32).astype(jnp.bfloat16)
        # Head split: static lane slices -> per-head scratch (amortized over n_q tiles).
        for h in range(H):
            k_sc[h, :, :] = k_flat[:, h * d:(h + 1) * d]
            v_sc[h, :, :] = v_flat[:, h * d:(h + 1) * d]

    # ---- Per query tile ----
    x = x_ref[0].astype(jnp.float32)                               # (TQ, D)
    xn = layernorm(x).astype(jnp.bfloat16)                         # (TQ, D)
    # Full-width Q projection; scale is pre-folded into Wq on the host.
    q_flat = jnp.dot(xn, wq_ref[...],
                     preferred_element_type=jnp.float32).astype(jnp.bfloat16)
    for h in range(H):
        q_sc[h, :, :] = q_flat[:, h * d:(h + 1) * d]

    q3 = q_sc[...]                                                 # (H, TQ, d) bf16
    k3 = k_sc[...]                                                 # (H, M, d)  bf16
    v3 = v_sc[...]                                                 # (H, M, d)  bf16

    s = jnp.einsum('hnf,hmf->hnm', q3, k3,
                   preferred_element_type=jnp.float32)             # (H, TQ, M) f32
    s = s + bias_ref[0].astype(jnp.float32)
    s = s - jnp.max(s, axis=-1, keepdims=True)
    p = jnp.exp(s)                                                 # unnormalized probs
    denom = jnp.sum(p, axis=-1, keepdims=True)                     # (H, TQ, 1)

    o = jnp.einsum('hnm,hmf->hnf', p.astype(jnp.bfloat16), v3,
                   preferred_element_type=jnp.float32)             # (H, TQ, d) f32
    # Exact softmax normalization on the small per-head output.
    o = (o / denom).astype(jnp.bfloat16)

    # Head merge ('b h n d -> b n (h d)') into a lane-dense (TQ, D) buffer,
    # then ONE full-D output projection (fused head reduction).
    for h in range(H):
        o_sc[:, h * d:(h + 1) * d] = o[h]

    y = jnp.dot(o_sc[...], wo_ref[...], preferred_element_type=jnp.float32)
    out_ref[0] = (y + bo_ref[...].astype(jnp.float32)).astype(out_ref.dtype)

    # TODO(synk): nn.Dropout(p>0) in training mode is not implemented
    # (p=0.0 / eval mode is an identity, which is what this kernel computes).


def _pick_q_tile(n):
    """Largest divisor of n that is a multiple of 8 and <= 128 (else full n)."""
    if n % 128 == 0:
        return 128
    for t in range(min(n, 128), 7, -1):
        if n % t == 0 and t % 8 == 0:
            return t
    return n


def cross_attention_pallas(x, context, rel_pos_bias, params, *, num_heads, q_tile=None):
    B, N, D = x.shape
    _, M, _ = context.shape
    H = num_heads
    assert D % H == 0
    d = D // H
    scale = float(d) ** -0.5

    if q_tile is None:
        q_tile = _pick_q_tile(N)
    assert N % q_tile == 0
    n_q = N // q_tile

    # PyTorch Linear computes y = x @ W.T.  Pre-transpose on the host, fold the
    # softmax scale into Wq, keep weights full-width (D, D) bf16 so the kernel
    # runs lane-dense MXU matmuls; the head split happens on the activations.
    wq = (params["wq"].T * scale).astype(jnp.bfloat16)
    wk = params["wk"].T.astype(jnp.bfloat16)
    wv = params["wv"].T.astype(jnp.bfloat16)
    wo = params["wo"].T.astype(jnp.bfloat16)
    bo = params["bo"].reshape(1, D).astype(jnp.float32)
    ln_g = params["ln_g"].reshape(1, D).astype(jnp.float32)
    ln_b = params["ln_b"].reshape(1, D).astype(jnp.float32)

    # Bias streamed at its original shape/dtype — no broadcast, no upcast.
    if rel_pos_bias.shape[0] == 1:
        bias_map = lambda b, qi: (0, 0, qi, 0)
    else:
        bias_map = lambda b, qi: (b, 0, qi, 0)

    kernel = functools.partial(_cross_attn_kernel, num_heads=H, eps=1e-5)

    return pl.pallas_call(
        kernel,
        out_shape=jax.ShapeDtypeStruct((B, N, D), x.dtype),
        grid_spec=pltpu.PrefetchScalarGridSpec(
            num_scalar_prefetch=0,
            grid=(B, n_q),
            in_specs=[
                pl.BlockSpec((1, q_tile, D), lambda b, qi: (b, qi, 0)),   # x
                pl.BlockSpec((1, M, D), lambda b, qi: (b, 0, 0)),         # context
                pl.BlockSpec((1, H, q_tile, M), bias_map),                # rel pos bias
                pl.BlockSpec((1, D), lambda b, qi: (0, 0)),               # ln gamma
                pl.BlockSpec((1, D), lambda b, qi: (0, 0)),               # ln beta
                pl.BlockSpec((D, D), lambda b, qi: (0, 0)),               # Wq (scaled)
                pl.BlockSpec((D, D), lambda b, qi: (0, 0)),               # Wk
                pl.BlockSpec((D, D), lambda b, qi: (0, 0)),               # Wv
                pl.BlockSpec((D, D), lambda b, qi: (0, 0)),               # Wo
                pl.BlockSpec((1, D), lambda b, qi: (0, 0)),               # bo
            ],
            out_specs=pl.BlockSpec((1, q_tile, D), lambda b, qi: (b, qi, 0)),
            scratch_shapes=[
                pltpu.VMEM((H, M, d), jnp.bfloat16),       # K cache (per batch)
                pltpu.VMEM((H, M, d), jnp.bfloat16),       # V cache (per batch)
                pltpu.VMEM((H, q_tile, d), jnp.bfloat16),  # per-head Q (per tile)
                pltpu.VMEM((q_tile, D), jnp.bfloat16),     # merged attention output
            ],
        ),
        # qi must be "arbitrary": K/V scratch is carried across query tiles of
        # the same batch.  b stays "parallel" for megacore sharding.
        compiler_params=pltpu.CompilerParams(
            dimension_semantics=("parallel", "arbitrary"),
            vmem_limit_bytes=48 * 1024 * 1024),
    )(x, context, rel_pos_bias, ln_g, ln_b, wq, wk, wv, wo, bo)


def cross_attention_reference(x, context, rel_pos_bias, params, *, num_heads):
    """Pure-JAX f32 reference mirroring the PyTorch forward exactly."""
    def ln(t):
        mu = t.mean(-1, keepdims=True)
        var = ((t - mu) ** 2).mean(-1, keepdims=True)
        return (t - mu) / jnp.sqrt(var + 1e-5) * params["ln_g"] + params["ln_b"]

    B, N, D = x.shape
    M = context.shape[1]
    H = num_heads
    d = D // H

    xn, cn = ln(x), ln(context)
    q = xn @ params["wq"].T
    k = cn @ params["wk"].T
    v = cn @ params["wv"].T
    q = q.reshape(B, N, H, d).transpose(0, 2, 1, 3)
    k = k.reshape(B, M, H, d).transpose(0, 2, 1, 3)
    v = v.reshape(B, M, H, d).transpose(0, 2, 1, 3)
    s = jnp.einsum("bhid,bhjd->bhij", q, k) * (float(d) ** -0.5)
    s = s + rel_pos_bias
    a = jax.nn.softmax(s, axis=-1)
    o = jnp.einsum("bhij,bhjd->bhid", a, v)
    o = o.transpose(0, 2, 1, 3).reshape(B, N, D)
    return o @ params["wo"].T + params["bo"]


if __name__ == "__main__":
    # Small shapes; q_tile=8 with N=16 exercises the per-batch K/V cache path
    # (n_q = 2 query tiles reuse the scratch computed at qi == 0).
    B, N, M, D, H = 2, 16, 8, 32, 4

    key = jax.random.PRNGKey(0)
    keys = jax.random.split(key, 10)

    x = jax.random.normal(keys[0], (B, N, D), dtype=jnp.float32)
    context = jax.random.normal(keys[1], (B, M, D), dtype=jnp.float32)
    rel_pos_bias = 0.1 * jax.random.normal(keys[2], (1, H, N, M), dtype=jnp.float32)

    params = {
        "wq": 0.1 * jax.random.normal(keys[3], (D, D), dtype=jnp.float32),
        "wk": 0.1 * jax.random.normal(keys[4], (D, D), dtype=jnp.float32),
        "wv": 0.1 * jax.random.normal(keys[5], (D, D), dtype=jnp.float32),
        "wo": 0.1 * jax.random.normal(keys[6], (D, D), dtype=jnp.float32),
        "bo": 0.1 * jax.random.normal(keys[7], (D,), dtype=jnp.float32),
        "ln_g": 1.0 + 0.1 * jax.random.normal(keys[8], (D,), dtype=jnp.float32),
        "ln_b": 0.1 * jax.random.normal(keys[9], (D,), dtype=jnp.float32),
    }

    out = cross_attention_pallas(x, context, rel_pos_bias, params,
                                 num_heads=H, q_tile=8)
    out = jax.block_until_ready(out)

    ref = cross_attention_reference(x, context, rel_pos_bias, params, num_heads=H)
    assert out.shape == (B, N, D)
    # bf16 weights / bf16 MXU operands with f32 accumulation vs. pure-f32 reference.
    assert jnp.allclose(out, ref, atol=3e-2, rtol=3e-2), "Pallas output mismatch vs reference"

    print("KERNEL_OK")
</pallas_src>

<mosaic_0001>
module attributes {stable_mosaic.version = 11 : i64} {
  func.func @_cross_attn_kernel(%arg0: i32, %arg1: i32, %arg2: memref<1x8x32xf32, #tpu.memory_space<vmem>>, %arg3: memref<1x8x32xf32, #tpu.memory_space<vmem>>, %arg4: memref<1x4x8x8xf32, #tpu.memory_space<vmem>>, %arg5: memref<1x32xf32, #tpu.memory_space<vmem>>, %arg6: memref<1x32xf32, #tpu.memory_space<vmem>>, %arg7: memref<32x32xbf16, #tpu.memory_space<vmem>>, %arg8: memref<32x32xbf16, #tpu.memory_space<vmem>>, %arg9: memref<32x32xbf16, #tpu.memory_space<vmem>>, %arg10: memref<32x32xbf16, #tpu.memory_space<vmem>>, %arg11: memref<1x32xf32, #tpu.memory_space<vmem>>, %arg12: memref<1x8x32xf32, #tpu.memory_space<vmem>>, %arg13: memref<4x8x8xbf16, #tpu.memory_space<vmem>>, %arg14: memref<4x8x8xbf16, #tpu.memory_space<vmem>>, %arg15: memref<4x8x8xbf16, #tpu.memory_space<vmem>>, %arg16: memref<8x32xbf16, #tpu.memory_space<vmem>>) attributes {dimension_semantics = [#tpu.dimension_semantics<parallel>, #tpu.dimension_semantics<arbitrary>], iteration_bounds = array<i64: 2, 2>, scalar_prefetch = 0 : i64, scratch_operands = 4 : i64, tpu.core_type = #tpu.core_type<tc>, window_params = [{transform_indices = @transform_0, window_bounds = array<i64: 1, 8, 32>}, {transform_indices = @transform_1, window_bounds = array<i64: 1, 8, 32>}, {transform_indices = @transform_2, window_bounds = array<i64: 1, 4, 8, 8>}, {pipeline_mode = #tpu.pipeline_mode<synchronous>, transform_indices = @transform_3, window_bounds = array<i64: 1, 32>}, {pipeline_mode = #tpu.pipeline_mode<synchronous>, transform_indices = @transform_4, window_bounds = array<i64: 1, 32>}, {pipeline_mode = #tpu.pipeline_mode<synchronous>, transform_indices = @transform_5, window_bounds = array<i64: 32, 32>}, {pipeline_mode = #tpu.pipeline_mode<synchronous>, transform_indices = @transform_6, window_bounds = array<i64: 32, 32>}, {pipeline_mode = #tpu.pipeline_mode<synchronous>, transform_indices = @transform_7, window_bounds = array<i64: 32, 32>}, {pipeline_mode = #tpu.pipeline_mode<synchronous>, transform_indices = @transform_8, window_bounds = array<i64: 32, 32>}, {pipeline_mode = #tpu.pipeline_mode<synchronous>, transform_indices = @transform_9, window_bounds = array<i64: 1, 32>}, {transform_indices = @transform_10, window_bounds = array<i64: 1, 8, 32>}]} {
    %c0 = arith.constant 0 : index
    %c0_0 = arith.constant 0 : index
    %0 = vector.load %arg5[%c0, %c0_0] : memref<1x32xf32, #tpu.memory_space<vmem>>, vector<1x32xf32>
    %c0_1 = arith.constant 0 : index
    %c0_2 = arith.constant 0 : index
    %1 = vector.load %arg6[%c0_1, %c0_2] : memref<1x32xf32, #tpu.memory_space<vmem>>, vector<1x32xf32>
    %c0_i32 = arith.constant 0 : i32
    %2 = arith.cmpi eq, %arg1, %c0_i32 : i32
    %3 = arith.extui %2 : i1 to i32
    %c0_i32_3 = arith.constant 0 : i32
    %4 = arith.cmpi ne, %3, %c0_i32_3 : i32
    scf.if %4 {
      %c0_55 = arith.constant 0 : index
      %c0_56 = arith.constant 0 : index
      %c0_57 = arith.constant 0 : index
      %89 = vector.load %arg3[%c0_55, %c0_56, %c0_57] : memref<1x8x32xf32, #tpu.memory_space<vmem>>, vector<1x8x32xf32>
      %90 = vector.shape_cast %89 : vector<1x8x32xf32> to vector<8x32xf32>
      %cst_58 = arith.constant dense<0.000000e+00> : vector<8xf32>
      %91 = vector.multi_reduction <add>, %90, %cst_58 [1] : vector<8x32xf32> to vector<8xf32>
      %92 = vector.shape_cast %91 : vector<8xf32> to vector<8x1xf32>
      %cst_59 = arith.constant 3.200000e+01 : f32
      %93 = vector.broadcast %cst_59 : f32 to vector<8x1xf32>
      %94 = arith.divf %92, %93 : vector<8x1xf32>
      %95 = vector.broadcast %94 : vector<8x1xf32> to vector<8x32xf32>
      %96 = arith.subf %90, %95 : vector<8x32xf32>
      %97 = arith.mulf %96, %96 : vector<8x32xf32>
      %cst_60 = arith.constant dense<0.000000e+00> : vector<8xf32>
      %98 = vector.multi_reduction <add>, %97, %cst_60 [1] : vector<8x32xf32> to vector<8xf32>
      %99 = vector.shape_cast %98 : vector<8xf32> to vector<8x1xf32>
      %cst_61 = arith.constant 3.200000e+01 : f32
      %100 = vector.broadcast %cst_61 : f32 to vector<8x1xf32>
      %101 = arith.divf %99, %100 : vector<8x1xf32>
      %102 = vector.broadcast %94 : vector<8x1xf32> to vector<8x32xf32>
      %103 = arith.subf %90, %102 : vector<8x32xf32>
      %cst_62 = arith.constant 9.99999974E-6 : f32
      %104 = vector.broadcast %cst_62 : f32 to vector<8x1xf32>
      %105 = arith.addf %101, %104 : vector<8x1xf32>
      %106 = math.rsqrt %105 : vector<8x1xf32>
      %107 = vector.broadcast %106 : vector<8x1xf32> to vector<8x32xf32>
      %108 = arith.mulf %103, %107 : vector<8x32xf32>
      %109 = vector.broadcast %0 : vector<1x32xf32> to vector<8x32xf32>
      %110 = arith.mulf %108, %109 : vector<8x32xf32>
      %111 = vector.broadcast %1 : vector<1x32xf32> to vector<8x32xf32>
      %112 = arith.addf %110, %111 : vector<8x32xf32>
      %113 = arith.truncf %112 : vector<8x32xf32> to vector<8x32xbf16>
      %c0_63 = arith.constant 0 : index
      %c0_64 = arith.constant 0 : index
      %114 = vector.load %arg8[%c0_63, %c0_64] : memref<32x32xbf16, #tpu.memory_space<vmem>>, vector<32x32xbf16>
      %cst_65 = arith.constant dense<0.000000e+00> : vector<8x32xf32>
      %115 = tpu.matmul %113, %114, %cst_65 {dimension_numbers = #tpu.dot_dimension_numbers<[1], [0], [0], [1], [0, 0, 1, 1], [], []>} : vector<8x32xbf16>, vector<32x32xbf16>, vector<8x32xf32> -> vector<8x32xf32>
      %116 = arith.truncf %115 : vector<8x32xf32> to vector<8x32xbf16>
      %c0_66 = arith.constant 0 : index
      %c0_67 = arith.constant 0 : index
      %117 = vector.load %arg9[%c0_66, %c0_67] : memref<32x32xbf16, #tpu.memory_space<vmem>>, vector<32x32xbf16>
      %cst_68 = arith.constant dense<0.000000e+00> : vector<8x32xf32>
      %118 = tpu.matmul %113, %117, %cst_68 {dimension_numbers = #tpu.dot_dimension_numbers<[1], [0], [0], [1], [0, 0, 1, 1], [], []>} : vector<8x32xbf16>, vector<32x32xbf16>, vector<8x32xf32> -> vector<8x32xf32>
      %119 = arith.truncf %118 : vector<8x32xf32> to vector<8x32xbf16>
      %120 = vector.extract_strided_slice %116 {offsets = [0, 0], sizes = [8, 8], strides = [1, 1]} : vector<8x32xbf16> to vector<8x8xbf16>
      %c0_69 = arith.constant 0 : index
      %c0_70 = arith.constant 0 : index
      %c0_71 = arith.constant 0 : index
      %121 = vector.load %arg13[%c0_69, %c0_70, %c0_71] : memref<4x8x8xbf16, #tpu.memory_space<vmem>>, vector<1x8x8xbf16>
      %122 = vector.shape_cast %121 : vector<1x8x8xbf16> to vector<8x8xbf16>
      %123 = vector.shape_cast %120 : vector<8x8xbf16> to vector<1x8x8xbf16>
      tpu.vector_store %arg13[%c0_69, %c0_70, %c0_71], %123 {strides = array<i32>} : memref<4x8x8xbf16, #tpu.memory_space<vmem>>, vector<1x8x8xbf16>,
      %124 = vector.extract_strided_slice %119 {offsets = [0, 0], sizes = [8, 8], strides = [1, 1]} : vector<8x32xbf16> to vector<8x8xbf16>
      %c0_72 = arith.constant 0 : index
      %c0_73 = arith.constant 0 : index
      %c0_74 = arith.constant 0 : index
      %125 = vector.load %arg14[%c0_72, %c0_73, %c0_74] : memref<4x8x8xbf16, #tpu.memory_space<vmem>>, vector<1x8x8xbf16>
      %126 = vector.shape_cast %125 : vector<1x8x8xbf16> to vector<8x8xbf16>
      %127 = vector.shape_cast %124 : vector<8x8xbf16> to vector<1x8x8xbf16>
      tpu.vector_store %arg14[%c0_72, %c0_73, %c0_74], %127 {strides = array<i32>} : memref<4x8x8xbf16, #tpu.memory_space<vmem>>, vector<1x8x8xbf16>,
      %128 = vector.extract_strided_slice %116 {offsets = [0, 8], sizes = [8, 8], strides = [1, 1]} : vector<8x32xbf16> to vector<8x8xbf16>
      %c1_75 = arith.constant 1 : index
      %c0_76 = arith.constant 0 : index
      %c0_77 = arith.constant 0 : index
      %129 = vector.load %arg13[%c1_75, %c0_76, %c0_77] : memref<4x8x8xbf16, #tpu.memory_space<vmem>>, vector<1x8x8xbf16>
      %130 = vector.shape_cast %129 : vector<1x8x8xbf16> to vector<8x8xbf16>
      %131 = vector.shape_cast %128 : vector<8x8xbf16> to vector<1x8x8xbf16>
      tpu.vector_store %arg13[%c1_75, %c0_76, %c0_77], %131 {strides = array<i32>} : memref<4x8x8xbf16, #tpu.memory_space<vmem>>, vector<1x8x8xbf16>,
      %132 = vector.extract_strided_slice %119 {offsets = [0, 8], sizes = [8, 8], strides = [1, 1]} : vector<8x32xbf16> to vector<8x8xbf16>
      %c1_78 = arith.constant 1 : index
      %c0_79 = arith.constant 0 : index
      %c0_80 = arith.constant 0 : index
      %133 = vector.load %arg14[%c1_78, %c0_79, %c0_80] : memref<4x8x8xbf16, #tpu.memory_space<vmem>>, vector<1x8x8xbf16>
      %134 = vector.shape_cast %133 : vector<1x8x8xbf16> to vector<8x8xbf16>
      %135 = vector.shape_cast %132 : vector<8x8xbf16> to vector<1x8x8xbf16>
      tpu.vector_store %arg14[%c1_78, %c0_79, %c0_80], %135 {strides = array<i32>} : memref<4x8x8xbf16, #tpu.memory_space<vmem>>, vector<1x8x8xbf16>,
      %136 = vector.extract_strided_slice %116 {offsets = [0, 16], sizes = [8, 8], strides = [1, 1]} : vector<8x32xbf16> to vector<8x8xbf16>
      %c2_81 = arith.constant 2 : index
      %c0_82 = arith.constant 0 : index
      %c0_83 = arith.constant 0 : index
      %137 = vector.load %arg13[%c2_81, %c0_82, %c0_83] : memref<4x8x8xbf16, #tpu.memory_space<vmem>>, vector<1x8x8xbf16>
      %138 = vector.shape_cast %137 : vector<1x8x8xbf16> to vector<8x8xbf16>
      %139 = vector.shape_cast %136 : vector<8x8xbf16> to vector<1x8x8xbf16>
      tpu.vector_store %arg13[%c2_81, %c0_82, %c0_83], %139 {strides = array<i32>} : memref<4x8x8xbf16, #tpu.memory_space<vmem>>, vector<1x8x8xbf16>,
      %140 = vector.extract_strided_slice %119 {offsets = [0, 16], sizes = [8, 8], strides = [1, 1]} : vector<8x32xbf16> to vector<8x8xbf16>
      %c2_84 = arith.constant 2 : index
      %c0_85 = arith.constant 0 : index
      %c0_86 = arith.constant 0 : index
      %141 = vector.load %arg14[%c2_84, %c0_85, %c0_86] : memref<4x8x8xbf16, #tpu.memory_space<vmem>>, vector<1x8x8xbf16>
      %142 = vector.shape_cast %141 : vector<1x8x8xbf16> to vector<8x8xbf16>
      %143 = vector.shape_cast %140 : vector<8x8xbf16> to vector<1x8x8xbf16>
      tpu.vector_store %arg14[%c2_84, %c0_85, %c0_86], %143 {strides = array<i32>} : memref<4x8x8xbf16, #tpu.memory_space<vmem>>, vector<1x8x8xbf16>,
      %144 = vector.extract_strided_slice %116 {offsets = [0, 24], sizes = [8, 8], strides = [1, 1]} : vector<8x32xbf16> to vector<8x8xbf16>
      %c3_87 = arith.constant 3 : index
      %c0_88 = arith.constant 0 : index
      %c0_89 = arith.constant 0 : index
      %145 = vector.load %arg13[%c3_87, %c0_88, %c0_89] : memref<4x8x8xbf16, #tpu.memory_space<vmem>>, vector<1x8x8xbf16>
      %146 = vector.shape_cast %145 : vector<1x8x8xbf16> to vector<8x8xbf16>
      %147 = vector.shape_cast %144 : vector<8x8xbf16> to vector<1x8x8xbf16>
      tpu.vector_store %arg13[%c3_87, %c0_88, %c0_89], %147 {strides = array<i32>} : memref<4x8x8xbf16, #tpu.memory_space<vmem>>, vector<1x8x8xbf16>,
      %148 = vector.extract_strided_slice %119 {offsets = [0, 24], sizes = [8, 8], strides = [1, 1]} : vector<8x32xbf16> to vector<8x8xbf16>
      %c3_90 = arith.constant 3 : index
      %c0_91 = arith.constant 0 : index
      %c0_92 = arith.constant 0 : index
      %149 = vector.load %arg14[%c3_90, %c0_91, %c0_92] : memref<4x8x8xbf16, #tpu.memory_space<vmem>>, vector<1x8x8xbf16>
      %150 = vector.shape_cast %149 : vector<1x8x8xbf16> to vector<8x8xbf16>
      %151 = vector.shape_cast %148 : vector<8x8xbf16> to vector<1x8x8xbf16>
      tpu.vector_store %arg14[%c3_90, %c0_91, %c0_92], %151 {strides = array<i32>} : memref<4x8x8xbf16, #tpu.memory_space<vmem>>, vector<1x8x8xbf16>,
    } else {
    }
    %c0_4 = arith.constant 0 : index
    %c0_5 = arith.constant 0 : index
    %c0_6 = arith.constant 0 : index
    %5 = vector.load %arg2[%c0_4, %c0_5, %c0_6] : memref<1x8x32xf32, #tpu.memory_space<vmem>>, vector<1x8x32xf32>
    %6 = vector.shape_cast %5 : vector<1x8x32xf32> to vector<8x32xf32>
    %cst = arith.constant dense<0.000000e+00> : vector<8xf32>
    %7 = vector.multi_reduction <add>, %6, %cst [1] : vector<8x32xf32> to vector<8xf32>
    %8 = vector.shape_cast %7 : vector<8xf32> to vector<8x1xf32>
    %cst_7 = arith.constant 3.200000e+01 : f32
    %9 = vector.broadcast %cst_7 : f32 to vector<8x1xf32>
    %10 = arith.divf %8, %9 : vector<8x1xf32>
    %11 = vector.broadcast %10 : vector<8x1xf32> to vector<8x32xf32>
    %12 = arith.subf %6, %11 : vector<8x32xf32>
    %13 = arith.mulf %12, %12 : vector<8x32xf32>
    %cst_8 = arith.constant dense<0.000000e+00> : vector<8xf32>
    %14 = vector.multi_reduction <add>, %13, %cst_8 [1] : vector<8x32xf32> to vector<8xf32>
    %15 = vector.shape_cast %14 : vector<8xf32> to vector<8x1xf32>
    %cst_9 = arith.constant 3.200000e+01 : f32
    %16 = vector.broadcast %cst_9 : f32 to vector<8x1xf32>
    %17 = arith.divf %15, %16 : vector<8x1xf32>
    %18 = vector.broadcast %10 : vector<8x1xf32> to vector<8x32xf32>
    %19 = arith.subf %6, %18 : vector<8x32xf32>
    %cst_10 = arith.constant 9.99999974E-6 : f32
    %20 = vector.broadcast %cst_10 : f32 to vector<8x1xf32>
    %21 = arith.addf %17, %20 : vector<8x1xf32>
    %22 = math.rsqrt %21 : vector<8x1xf32>
    %23 = vector.broadcast %22 : vector<8x1xf32> to vector<8x32xf32>
    %24 = arith.mulf %19, %23 : vector<8x32xf32>
    %25 = vector.broadcast %0 : vector<1x32xf32> to vector<8x32xf32>
    %26 = arith.mulf %24, %25 : vector<8x32xf32>
    %27 = vector.broadcast %1 : vector<1x32xf32> to vector<8x32xf32>
    %28 = arith.addf %26, %27 : vector<8x32xf32>
    %29 = arith.truncf %28 : vector<8x32xf32> to vector<8x32xbf16>
    %c0_11 = arith.constant 0 : index
    %c0_12 = arith.constant 0 : index
    %30 = vector.load %arg7[%c0_11, %c0_12] : memref<32x32xbf16, #tpu.memory_space<vmem>>, vector<32x32xbf16>
    %cst_13 = arith.constant dense<0.000000e+00> : vector<8x32xf32>
    %31 = tpu.matmul %29, %30, %cst_13 {dimension_numbers = #tpu.dot_dimension_numbers<[1], [0], [0], [1], [0, 0, 1, 1], [], []>} : vector<8x32xbf16>, vector<32x32xbf16>, vector<8x32xf32> -> vector<8x32xf32>
    %32 = arith.truncf %31 : vector<8x32xf32> to vector<8x32xbf16>
    %33 = vector.extract_strided_slice %32 {offsets = [0, 0], sizes = [8, 8], strides = [1, 1]} : vector<8x32xbf16> to vector<8x8xbf16>
    %c0_14 = arith.constant 0 : index
    %c0_15 = arith.constant 0 : index
    %c0_16 = arith.constant 0 : index
    %34 = vector.load %arg15[%c0_14, %c0_15, %c0_16] : memref<4x8x8xbf16, #tpu.memory_space<vmem>>, vector<1x8x8xbf16>
    %35 = vector.shape_cast %34 : vector<1x8x8xbf16> to vector<8x8xbf16>
    %36 = vector.shape_cast %33 : vector<8x8xbf16> to vector<1x8x8xbf16>
    tpu.vector_store %arg15[%c0_14, %c0_15, %c0_16], %36 {strides = array<i32>} : memref<4x8x8xbf16, #tpu.memory_space<vmem>>, vector<1x8x8xbf16>,
    %37 = vector.extract_strided_slice %32 {offsets = [0, 8], sizes = [8, 8], strides = [1, 1]} : vector<8x32xbf16> to vector<8x8xbf16>
    %c1 = arith.constant 1 : index
    %c0_17 = arith.constant 0 : index
    %c0_18 = arith.constant 0 : index
    %38 = vector.load %arg15[%c1, %c0_17, %c0_18] : memref<4x8x8xbf16, #tpu.memory_space<vmem>>, vector<1x8x8xbf16>
    %39 = vector.shape_cast %38 : vector<1x8x8xbf16> to vector<8x8xbf16>
    %40 = vector.shape_cast %37 : vector<8x8xbf16> to vector<1x8x8xbf16>
    tpu.vector_store %arg15[%c1, %c0_17, %c0_18], %40 {strides = array<i32>} : memref<4x8x8xbf16, #tpu.memory_space<vmem>>, vector<1x8x8xbf16>,
    %41 = vector.extract_strided_slice %32 {offsets = [0, 16], sizes = [8, 8], strides = [1, 1]} : vector<8x32xbf16> to vector<8x8xbf16>
    %c2 = arith.constant 2 : index
    %c0_19 = arith.constant 0 : index
    %c0_20 = arith.constant 0 : index
    %42 = vector.load %arg15[%c2, %c0_19, %c0_20] : memref<4x8x8xbf16, #tpu.memory_space<vmem>>, vector<1x8x8xbf16>
    %43 = vector.shape_cast %42 : vector<1x8x8xbf16> to vector<8x8xbf16>
    %44 = vector.shape_cast %41 : vector<8x8xbf16> to vector<1x8x8xbf16>
    tpu.vector_store %arg15[%c2, %c0_19, %c0_20], %44 {strides = array<i32>} : memref<4x8x8xbf16, #tpu.memory_space<vmem>>, vector<1x8x8xbf16>,
    %45 = vector.extract_strided_slice %32 {offsets = [0, 24], sizes = [8, 8], strides = [1, 1]} : vector<8x32xbf16> to vector<8x8xbf16>
    %c3 = arith.constant 3 : index
    %c0_21 = arith.constant 0 : index
    %c0_22 = arith.constant 0 : index
    %46 = vector.load %arg15[%c3, %c0_21, %c0_22] : memref<4x8x8xbf16, #tpu.memory_space<vmem>>, vector<1x8x8xbf16>
    %47 = vector.shape_cast %46 : vector<1x8x8xbf16> to vector<8x8xbf16>
    %48 = vector.shape_cast %45 : vector<8x8xbf16> to vector<1x8x8xbf16>
    tpu.vector_store %arg15[%c3, %c0_21, %c0_22], %48 {strides = array<i32>} : memref<4x8x8xbf16, #tpu.memory_space<vmem>>, vector<1x8x8xbf16>,
    %c0_23 = arith.constant 0 : index
    %c0_24 = arith.constant 0 : index
    %c0_25 = arith.constant 0 : index
    %49 = vector.load %arg15[%c0_23, %c0_24, %c0_25] : memref<4x8x8xbf16, #tpu.memory_space<vmem>>, vector<4x8x8xbf16>
    %c0_26 = arith.constant 0 : index
    %c0_27 = arith.constant 0 : index
    %c0_28 = arith.constant 0 : index
    %50 = vector.load %arg13[%c0_26, %c0_27, %c0_28] : memref<4x8x8xbf16, #tpu.memory_space<vmem>>, vector<4x8x8xbf16>
    %c0_29 = arith.constant 0 : index
    %c0_30 = arith.constant 0 : index
    %c0_31 = arith.constant 0 : index
    %51 = vector.load %arg14[%c0_29, %c0_30, %c0_31] : memref<4x8x8xbf16, #tpu.memory_space<vmem>>, vector<4x8x8xbf16>
    "tpu.trace_start"() <{level = 10 : i32, message = "hnf,hmf->hnm"}> : () -> ()
    %cst_32 = arith.constant dense<0.000000e+00> : vector<4x8x8xf32>
    %52 = tpu.matmul %49, %50, %cst_32 {dimension_numbers = #tpu.dot_dimension_numbers<[2], [2], [1], [1], [0, 0, 0, 1, 1, 1], [0], [0]>} : vector<4x8x8xbf16>, vector<4x8x8xbf16>, vector<4x8x8xf32> -> vector<4x8x8xf32>
    "tpu.trace_stop"() : () -> ()
    %c0_33 = arith.constant 0 : index
    %c0_34 = arith.constant 0 : index
    %c0_35 = arith.constant 0 : index
    %c0_36 = arith.constant 0 : index
    %53 = vector.load %arg4[%c0_33, %c0_34, %c0_35, %c0_36] : memref<1x4x8x8xf32, #tpu.memory_space<vmem>>, vector<1x4x8x8xf32>
    %54 = vector.shape_cast %53 : vector<1x4x8x8xf32> to vector<4x8x8xf32>
    %55 = arith.addf %52, %54 : vector<4x8x8xf32>
    %cst_37 = arith.constant dense<0xFF800000> : vector<4x8xf32>
    %56 = vector.multi_reduction <maximumf>, %55, %cst_37 [2] : vector<4x8x8xf32> to vector<4x8xf32>
    %57 = vector.shape_cast %56 : vector<4x8xf32> to vector<4x8x1xf32>
    %58 = vector.broadcast %57 : vector<4x8x1xf32> to vector<4x8x8xf32>
    %59 = arith.subf %55, %58 : vector<4x8x8xf32>
    %60 = math.exp %59 : vector<4x8x8xf32>
    %cst_38 = arith.constant dense<0.000000e+00> : vector<4x8xf32>
    %61 = vector.multi_reduction <add>, %60, %cst_38 [2] : vector<4x8x8xf32> to vector<4x8xf32>
    %62 = vector.shape_cast %61 : vector<4x8xf32> to vector<4x8x1xf32>
    %63 = arith.truncf %60 : vector<4x8x8xf32> to vector<4x8x8xbf16>
    "tpu.trace_start"() <{level = 10 : i32, message = "hnm,hmf->hnf"}> : () -> ()
    %cst_39 = arith.constant dense<0.000000e+00> : vector<4x8x8xf32>
    %64 = tpu.matmul %63, %51, %cst_39 {dimension_numbers = #tpu.dot_dimension_numbers<[2], [1], [1], [2], [0, 0, 0, 1, 1, 2], [0], [0]>} : vector<4x8x8xbf16>, vector<4x8x8xbf16>, vector<4x8x8xf32> -> vector<4x8x8xf32>
    "tpu.trace_stop"() : () -> ()
    %65 = vector.broadcast %62 : vector<4x8x1xf32> to vector<4x8x8xf32>
    %66 = arith.divf %64, %65 : vector<4x8x8xf32>
    %67 = arith.truncf %66 : vector<4x8x8xf32> to vector<4x8x8xbf16>
    %68 = vector.extract_strided_slice %67 {offsets = [0, 0, 0], sizes = [1, 8, 8], strides = [1, 1, 1]} : vector<4x8x8xbf16> to vector<1x8x8xbf16>
    %69 = vector.shape_cast %68 : vector<1x8x8xbf16> to vector<8x8xbf16>
    %c0_40 = arith.constant 0 : index
    %c0_41 = arith.constant 0 : index
    %70 = vector.load %arg16[%c0_40, %c0_41] : memref<8x32xbf16, #tpu.memory_space<vmem>>, vector<8x8xbf16>
    tpu.vector_store %arg16[%c0_40, %c0_41], %69 {strides = array<i32>} : memref<8x32xbf16, #tpu.memory_space<vmem>>, vector<8x8xbf16>,
    %71 = vector.extract_strided_slice %67 {offsets = [1, 0, 0], sizes = [1, 8, 8], strides = [1, 1, 1]} : vector<4x8x8xbf16> to vector<1x8x8xbf16>
    %72 = vector.shape_cast %71 : vector<1x8x8xbf16> to vector<8x8xbf16>
    %c0_42 = arith.constant 0 : index
    %c8 = arith.constant 8 : index
    %73 = vector.load %arg16[%c0_42, %c8] : memref<8x32xbf16, #tpu.memory_space<vmem>>, vector<8x8xbf16>
    tpu.vector_store %arg16[%c0_42, %c8], %72 {strides = array<i32>} : memref<8x32xbf16, #tpu.memory_space<vmem>>, vector<8x8xbf16>,
    %74 = vector.extract_strided_slice %67 {offsets = [2, 0, 0], sizes = [1, 8, 8], strides = [1, 1, 1]} : vector<4x8x8xbf16> to vector<1x8x8xbf16>
    %75 = vector.shape_cast %74 : vector<1x8x8xbf16> to vector<8x8xbf16>
    %c0_43 = arith.constant 0 : index
    %c16 = arith.constant 16 : index
    %76 = vector.load %arg16[%c0_43, %c16] : memref<8x32xbf16, #tpu.memory_space<vmem>>, vector<8x8xbf16>
    tpu.vector_store %arg16[%c0_43, %c16], %75 {strides = array<i32>} : memref<8x32xbf16, #tpu.memory_space<vmem>>, vector<8x8xbf16>,
    %77 = vector.extract_strided_slice %67 {offsets = [3, 0, 0], sizes = [1, 8, 8], strides = [1, 1, 1]} : vector<4x8x8xbf16> to vector<1x8x8xbf16>
    %78 = vector.shape_cast %77 : vector<1x8x8xbf16> to vector<8x8xbf16>
    %c0_44 = arith.constant 0 : index
    %c24 = arith.constant 24 : index
    %79 = vector.load %arg16[%c0_44, %c24] : memref<8x32xbf16, #tpu.memory_space<vmem>>, vector<8x8xbf16>
    tpu.vector_store %arg16[%c0_44, %c24], %78 {strides = array<i32>} : memref<8x32xbf16, #tpu.memory_space<vmem>>, vector<8x8xbf16>,
    %c0_45 = arith.constant 0 : index
    %c0_46 = arith.constant 0 : index
    %80 = vector.load %arg16[%c0_45, %c0_46] : memref<8x32xbf16, #tpu.memory_space<vmem>>, vector<8x32xbf16>
    %c0_47 = arith.constant 0 : index
    %c0_48 = arith.constant 0 : index
    %81 = vector.load %arg10[%c0_47, %c0_48] : memref<32x32xbf16, #tpu.memory_space<vmem>>, vector<32x32xbf16>
    %cst_49 = arith.constant dense<0.000000e+00> : vector<8x32xf32>
    %82 = tpu.matmul %80, %81, %cst_49 {dimension_numbers = #tpu.dot_dimension_numbers<[1], [0], [0], [1], [0, 0, 1, 1], [], []>} : vector<8x32xbf16>, vector<32x32xbf16>, vector<8x32xf32> -> vector<8x32xf32>
    %c0_50 = arith.constant 0 : index
    %c0_51 = arith.constant 0 : index
    %83 = vector.load %arg11[%c0_50, %c0_51] : memref<1x32xf32, #tpu.memory_space<vmem>>, vector<1x32xf32>
    %84 = vector.broadcast %83 : vector<1x32xf32> to vector<8x32xf32>
    %85 = arith.addf %82, %84 : vector<8x32xf32>
    %c0_52 = arith.constant 0 : index
    %c0_53 = arith.constant 0 : index
    %c0_54 = arith.constant 0 : index
    %86 = vector.load %arg12[%c0_52, %c0_53, %c0_54] : memref<1x8x32xf32, #tpu.memory_space<vmem>>, vector<1x8x32xf32>
    %87 = vector.shape_cast %86 : vector<1x8x32xf32> to vector<8x32xf32>
    %88 = vector.shape_cast %85 : vector<8x32xf32> to vector<1x8x32xf32>
    tpu.vector_store %arg12[%c0_52, %c0_53, %c0_54], %88 {strides = array<i32>} : memref<1x8x32xf32, #tpu.memory_space<vmem>>, vector<1x8x32xf32>,
    return
  }
  func.func @transform_0(%arg0: i32, %arg1: i32) -> (i32, i32, i32) {
    %c0_i32 = arith.constant 0 : i32
    %c0_i32_0 = arith.constant 0 : i32
    return %arg0, %arg1, %c0_i32 : i32, i32, i32
  }
  func.func @transform_1(%arg0: i32, %arg1: i32) -> (i32, i32, i32) {
    %c0_i32 = arith.constant 0 : i32
    %c0_i32_0 = arith.constant 0 : i32
    %c0_i32_1 = arith.constant 0 : i32
    return %arg0, %c0_i32, %c0_i32_0 : i32, i32, i32
  }
  func.func @transform_2(%arg0: i32, %arg1: i32) -> (i32, i32, i32, i32) {
    %c0_i32 = arith.constant 0 : i32
    %c0_i32_0 = arith.constant 0 : i32
    %c0_i32_1 = arith.constant 0 : i32
    %c0_i32_2 = arith.constant 0 : i32
    return %c0_i32, %c0_i32_0, %arg1, %c0_i32_1 : i32, i32, i32, i32
  }
  func.func @transform_3(%arg0: i32, %arg1: i32) -> (i32, i32) {
    %c0_i32 = arith.constant 0 : i32
    %c0_i32_0 = arith.constant 0 : i32
    %c0_i32_1 = arith.constant 0 : i32
    return %c0_i32, %c0_i32_0 : i32, i32
  }
  func.func @transform_4(%arg0: i32, %arg1: i32) -> (i32, i32) {
    %c0_i32 = arith.constant 0 : i32
    %c0_i32_0 = arith.constant 0 : i32
    %c0_i32_1 = arith.constant 0 : i32
    return %c0_i32, %c0_i32_0 : i32, i32
  }
  func.func @transform_5(%arg0: i32, %arg1: i32) -> (i32, i32) {
    %c0_i32 = arith.constant 0 : i32
    %c0_i32_0 = arith.constant 0 : i32
    %c0_i32_1 = arith.constant 0 : i32
    return %c0_i32, %c0_i32_0 : i32, i32
  }
  func.func @transform_6(%arg0: i32, %arg1: i32) -> (i32, i32) {
    %c0_i32 = arith.constant 0 : i32
    %c0_i32_0 = arith.constant 0 : i32
    %c0_i32_1 = arith.constant 0 : i32
    return %c0_i32, %c0_i32_0 : i32, i32
  }
  func.func @transform_7(%arg0: i32, %arg1: i32) -> (i32, i32) {
    %c0_i32 = arith.constant 0 : i32
    %c0_i32_0 = arith.constant 0 : i32
    %c0_i32_1 = arith.constant 0 : i32
    return %c0_i32, %c0_i32_0 : i32, i32
  }
  func.func @transform_8(%arg0: i32, %arg1: i32) -> (i32, i32) {
    %c0_i32 = arith.constant 0 : i32
    %c0_i32_0 = arith.constant 0 : i32
    %c0_i32_1 = arith.constant 0 : i32
    return %c0_i32, %c0_i32_0 : i32, i32
  }
  func.func @transform_9(%arg0: i32, %arg1: i32) -> (i32, i32) {
    %c0_i32 = arith.constant 0 : i32
    %c0_i32_0 = arith.constant 0 : i32
    %c0_i32_1 = arith.constant 0 : i32
    return %c0_i32, %c0_i32_0 : i32, i32
  }
  func.func @transform_10(%arg0: i32, %arg1: i32) -> (i32, i32, i32) {
    %c0_i32 = arith.constant 0 : i32
    %c0_i32_0 = arith.constant 0 : i32
    return %arg0, %arg1, %c0_i32 : i32, i32, i32
  }
}

</mosaic_0001>

<bundles_post_ra>
// kernel: tpu_custom_call.1
= control target key start
LH: loop header
LB: loop body
LE: loop exit
PB: predicated region body
PF: predicated region fallthrough
CT: control target
= control target key end

     0   :  { %s2210_s0 = inlined_call_operand.vmem [shape: f32[2,16,32], index: 0, kind: input, shape index: {}]   ;;  %s2211_s1 = inlined_call_operand.vmem [shape: f32[2,8,32], index: 1, kind: input, shape index: {}]   ;;  %s2212_s2 = inlined_call_operand.vmem [shape: f32[1,4,16,8], index: 2, kind: input, shape index: {}]   ;;  %s2213_s3 = inlined_call_operand.vmem [shape: f32[1,32], index: 3, kind: input, shape index: {}]   ;;  %s2214_s4 = inlined_call_operand.vmem [shape: f32[1,32], index: 4, kind: input, shape index: {}]   ;;  %s2215_s5 = inlined_call_operand.vmem [shape: bf16[32,32], index: 5, kind: input, shape index: {}]   ;;  %s2216_s6 = inlined_call_operand.vmem [shape: bf16[32,32], index: 6, kind: input, shape index: {}]   ;;  %s2217_s7 = inlined_call_operand.vmem [shape: bf16[32,32], index: 7, kind: input, shape index: {}]   ;;  %s2218_s8 = inlined_call_operand.vmem [shape: bf16[32,32], index: 8, kind: input, shape index: {}]   ;;  %s2219_s9 = inlined_call_operand.vmem [shape: f32[1,32], index: 9, kind: input, shape index: {}]   ;;  %s2220_s10 = inlined_call_operand.hbm [shape: f32[2,16,32], index: 10, kind: output, shape index: {}]  }
   0x1   :  { %2228 = sst [smem:[#allocation15_spill]] %s2212_s2 }
   0x2   :  { %2229 = sst [smem:[#allocation16_spill]] %s2213_s3 }
   0x3   :  { %2230 = sst [smem:[#allocation17_spill]] %s2214_s4 }
   0x4   :  { %2231 = sst [smem:[#allocation18_spill]] %s2218_s8 }
   0x5   :  { %2232 = sst [smem:[#allocation19_spill]] %s2219_s9 }
   0x6   :  { %2233 = sst [smem:[#allocation20_spill]] %s2220_s10 }
   0x7   :  { %15 = vsyncpa [#allocation8], 0 }
   0x8   :  { %17 = vsyncpa [#allocation8 + $0x1], 0  ;;  %s1894_s13 = smov 0   ;;  %s1896_s14 = smov 0  }
   0x9   :  { %s1898_s15 = smov 0   ;;  %s1900_s16 = smov 0  }
   0xa   :  { %s1902_s17 = smov 0   ;;  %s1904_s18 = smov 0  }
   0xb   :  { %s1906_s19 = smov 0   ;;  %s1908_s20 = smov 0  }
   0xc   :  { %s1910_s21 = smov 0   ;;  %s1912_s22 = smov 0  }
   0xd LB: > { %2234 = sst [smem:[#allocation10_spill]] %s1815_s20  ;;  %s1426_s23 = sadd.s32 4294967295, %s1823_s22   ;;  %s1823_s22 = sphi %s1912_s22, %s23_s22   ;;  %s1819_s21 = sphi %s1910_s21, %s2253_s21   ;;  %s1815_s20 = sphi %s1908_s20, %s2252_s20   ;;  %s1811_s19 = sphi %s1906_s19, %s2251_s19   ;;  %s1807_s18 = sphi %s1904_s18, %s2250_s18   ;;  %s1803_s17 = sphi %s1902_s17, %s2258_s17   ;;  %s1799_s16 = sphi %s1900_s16, %s2257_s16   ;;  %s1795_s15 = sphi %s1898_s15, %s2256_s15   ;;  %s1791_s14 = sphi %s1896_s14, %s2255_s14   ;;  %s1787_s13 = sphi %s1894_s13, %s2254_s13  }
   0xe   : > { %2235 = sst [smem:[#allocation11_spill]] %s1819_s21  ;;  %s1427_s24 = sadd.s32 4294967294, %s1823_s22  }
   0xf   : > { %s32_s25 = sadd.s32 1, %s1815_s20  ;;  %s35_s26 = sadd.s32 1, %s1819_s21 }
  0x10   : > { %p33_p0 = scmp.ge.s32.totalorder %s32_s25, 2  ;;  %s96_s27 = sadd.s32 1, %s1803_s17 }
  0x11   : > { %p103_p1 = scmp.ne.s32.totalorder %s1803_s17, %s1799_s16  ;;  %p104_p2 = scmp.eq.s32.totalorder %s1823_s22, 0 }
  0x12   : > { %s2260_s25 = smov (%p33_p0, %s32_s25), 0  ;;  %s2262_s26 = smov (!%p33_p0, %s35_s26), %s1819_s21 }
  0x13   : > { %2236 = sst [smem:[#allocation12_spill]] %s2260_s25  ;;  %s93_s28 = ssub.s32 %s1815_s20, %s2260_s25 }
  0x14   : > { %p1957_p3 = por %p104_p2, %p103_p1  ;;  %p37_p4 = scmp.ge.s32.totalorder %s2262_s26, 2 }
  0x15   : > { %p94_p5 = scmp.eq.s32.totalorder %s93_s28, 0  ;;  %s271_s30 = sadd.s32 1, %s1795_s15 }
  0x16   : > { %p281_p6 = scmp.ne.s32.totalorder %s1795_s15, %s1791_s14  ;;  %s2264_s26 = smov (%p37_p4, %s2262_s26), 0 }
  0x17   : > { %2238 = sst [smem:[#allocation13_spill]] %s2264_s26  ;;  %s266_s12 = ssub.s32 %s1819_s21, %s2264_s26 }
  0x18   : > { %s1967_s11 = scalar_select %p94_p5, %s1803_s17, %s96_s27  }
  0x19   : > { %p282_p7 = scmp.eq.s32.totalorder %s1426_s23, 3  ;;  %s268_s10 = sor.u32 %s266_s12, %s93_s28 }
  0x1a   : > { %2239 = sst [smem:[#allocation14_spill]] %s1967_s11  ;;  %p287_p8 = scmp.ne.s32.totalorder %s1791_s14, %s1787_s13 }
  0x1b   : > { %p269_p9 = scmp.eq.s32.totalorder %s268_s10, 0  ;;  %p1973_p10 = por %p282_p7, %p281_p6 }
  0x1c   : > { %p288_p11 = scmp.eq.s32.totalorder %s1427_s24, 3  ;;  %p1429_p13 = scmp.ge.s32.totalorder %s1823_s22, 4 }
  0x1d   : > { %s1978_s9 = scalar_select %p269_p9, %s1795_s15, %s271_s30  }
  0x1e   : > { %p1980_p12 = por %p288_p11, %p287_p8  ;;  %325 = sbr.rel (%p1429_p13) target bundleno = 49 (0x31), region = 44 }
  0x25   : > { %346 = sbr.rel (!%p1957_p3) target bundleno = 49 (0x31), region = 56  ;;  %s348_s10 = sand.u32 (%p1957_p3), 1, %s1803_s17  }
  0x26   : > { %s1431_s23 = sshll.u32 (%p1957_p3), %s1815_s20, 3  ;;  %s1430_s27 = sshll.u32 (%p1957_p3), %s348_s10, 5 }
  0x27   : > { %s2242_s2 = sld [smem:[#allocation15_spill]] (%p1957_p3)  ;;  %s350_s30 = scalar_lea.vmem (%p1957_p3), [#allocation6], %s1430_s27 }
  0x2d   : > { %s352_s24 = scalar_lea.vmem %s2242_s2, %s1431_s23 }
  0x2e   : > { %v386_v0 = vld [vmem:[%s352_s24] sm:$0xff]  ;;  %v388_v1 = vld [vmem:[%s352_s24 + $0x10] sm:$0xff] }
  0x2f   : > { %v390_v2 = vld [vmem:[%s352_s24 + $0x20] sm:$0xff]  ;;  %387 = vst [vmem:[%s350_s30] sm:$0xff] %v386_v0  ;;  %389 = vst [vmem:[%s350_s30 + $0x8] sm:$0xff] %v388_v1  ;;  %v392_v3 = vld [vmem:[%s352_s24 + $0x30] sm:$0xff] }
  0x30   : > { %391 = vst [vmem:[%s350_s30 + $0x10] sm:$0xff] %v390_v2  ;;  %393 = vst [vmem:[%s350_s30 + $0x18] sm:$0xff] %v392_v3 }
  0x31 PF: > { %p1432_p0 = scmp.ge.s32.totalorder %s1823_s22, 1  ;;  %p398_p1 = scmp.lt.s32.totalorder %s1823_s22, 5 }
  0x33   : > { %p399_p2 = pnand %p1432_p0, %p398_p1 }
  0x34   : > { %s405_s29 = sand.u32 (!%p399_p2), 1, %s1799_s16   ;;  %s2227_s10 = sand.u32 (!%p399_p2), 1, %s1791_s14  }
  0x35   : > { %402 = sbr.rel (%p399_p2) target bundleno = 2328 (0x918), region = 94  ;;  %s2243_s3 = sld [smem:[#allocation16_spill]] (!%p399_p2) }
  0x36   : > { %s2244_s4 = sld [smem:[#allocation17_spill]] (!%p399_p2)  ;;  %s1433_s24 = sshll.u32 (!%p399_p2), %s405_s29, 5 }
  0x37   : > { %s2008_s30 = sshll.u32 (!%p399_p2), %s2227_s10, 3  ;;  %p454_p3 = scmp.lt.s32.totalorder (!%p399_p2), %s1811_s19, 1 }
  0x38   : > { %p456_p4 = scmp.lt.s32.totalorder (!%p399_p2), %s1807_s18, 1  ;;  %s2022_s10 = scalar_lea.vmem (!%p399_p2), [#allocation6], %s1433_s24 }
  0x39   : > { %p1438_p5 = scmp.ne.s32.totalorder (!%p399_p2), %s1807_s18, 0 }
  0x3b   : > { %v1999_v4 = vld [vmem:[%s2243_s3] sm:$0x1] (!%p399_p2) }
  0x3c   : > { %v2004_v5 = vld [vmem:[%s2244_s4] sm:$0x1]  ;;  %s455_s2 = scalar_select %p454_p3, %s1811_s19, 1 }
  0x3d   : > { %s457_s16 = scalar_select %p456_p4, %s1807_s18, 1 }
  0x3e   : > { %s1435_s26 = sshll.u32 %s455_s2, 1  ;;  %s1437_s21 = sshll.u32 %s455_s2, 3  ;;  %vm474_vm0 = vcmask (!%p1438_p5), 261120   ;;  %v1685_v13 = vld [vmem:[%s2216_s6] sm:$0xff] (!%p1438_p5)   ;;  %v1825_v15 = vmov (!%p1438_p5), 0.0   ;;  %v1687_v16 = vld [vmem:[%s2216_s6 + $0x8] sm:$0xff] (!%p1438_p5)   ;;  %v490_v20 = vlaneseq (!%p1438_p5) }
  0x3f   : > { %s459_s20 = sadd.s32 %s1435_s26, %s457_s16  ;;  %s465_s3 = scalar_lea.vmem %s2211_s1, %s1437_s21  ;;  %v1686_v14 = vld [vmem:[%s2217_s7] sm:$0xff] (!%p1438_p5)   ;;  %1505 = vmatprep.subr.bf16.mxu0 (!%p1438_p5), %v1825_v15  ;;  %1513 = vmatprep.subr.bf16.mxu1 (!%p1438_p5), %v1825_v15  ;;  %v1688_v17 = vld [vmem:[%s2217_s7 + $0x8] sm:$0xff] (!%p1438_p5)   ;;  %vm1826_vm1 = vmmov (!%p1438_p5), 0   ;;  %vm621_vm2 = vcmask (!%p1438_p5), 60416  }
  0x40   : > { %s1436_s11 = sshll.u32 %s459_s20, 3  ;;  %s453_s4 = scalar_lea.vmem [#allocation7], %s2008_s30  ;;  %v473_v6 = vld [vmem:[%s465_s3] sm:$0xff] (!%p1438_p5)  ;;  %1506 = vmatpush3.bf16.msra.mxu0 (!%p1438_p5), %v1685_v13  ;;  %1514 = vmatpush3.bf16.msra.mxu1 (!%p1438_p5), %v1686_v14  ;;  %v491_v22 = vshrl.u32 (!%p1438_p5), %v490_v20, 7 }
  0x41   : > { %s2020_s29 = scalar_lea.vmem %s2210_s0, %s1436_s11  ;;  %472 = sbr.rel (%p1438_p5) target bundleno = 726 (0x2d6), region = 102  ;;  %v475_v7 = vsel (!%p1438_p5), %vm474_vm0, %v473_v6, 0.0  ;;  %1507 = vmatprep.subr.bf16.mxu0 (!%p1438_p5), %v1825_v15  ;;  %1515 = vmatprep.subr.bf16.mxu1 (!%p1438_p5), %v1825_v15 }
  0x42   : > { %476 = vadd.xlane.f32.xlu0 (!%p1438_p5), %v475_v7  ;;  %1509 = vmatprep.mubr.msk.bf16.mxu0 (!%p1438_p5), %vm1826_vm1, %v1825_v15  ;;  %v492_v23 = vsub.s32 (!%p1438_p5), 0, %v491_v22  ;;  %s1827_s23 = smov (!%p1438_p5), 112   ;;  %s1828_s27 = smov (!%p1438_p5), 120  }
  0x43   : > { %1517 = vmatprep.mubr.msk.bf16.mxu1 (!%p1438_p5), %vm1826_vm1, %v1825_v15  ;;  %s1829_s28 = smov (!%p1438_p5), 104  }
  0x44   : > { %1508 = vmatpush3.bf16.msra.mxu0 (!%p1438_p5), %v1687_v16  ;;  %1516 = vmatpush3.bf16.msra.mxu1 (!%p1438_p5), %v1688_v17  ;;  %v493_v24 = vrot.slane (!%p1438_p5), %v1999_v4, %v492_v23  ;;  %v500_v27 = vrot.slane (!%p1438_p5), %v2004_v5, %v492_v23 }
  0xcf   : > { %v477_v8 = vpop.xlane.xlu0 %476 }
  0xd0   : > { %v479_v9 = vmul.f32 0.03125, %v477_v8 }
  0xd2   : > { %v480_v10 = vsub.f32 %v473_v6, %v479_v9 }
  0xd4   : > { %v481_v11 = vmul.f32 %v480_v10, %v480_v10 }
  0xd6   : > { %v482_v12 = vsel %vm474_vm0, %v481_v11, 0.0 }
  0xd7   : > { %483 = vadd.xlane.f32.xlu0 %v482_v12 }
 0x164   : > { %v484_v18 = vpop.xlane.xlu0 %483 }
 0x165   : > { %v485_v19 = vmul.f32 0.03125, %v484_v18 }
 0x167   : > { %v486_v21 = vadd.f32 1e-05, %v485_v19 }
 0x169   : > { %1689 = vrsqrt.f32 %v486_v21 }
 0x173   : > { %v1690_v25 = vpop.eup %1689 }
 0x174   : > { %v488_v26 = vmul.f32 %v1690_v25, %v480_v10 }
 0x176   : > { %v495_v28 = vmul.f32 %v493_v24, %v488_v26 }
 0x178   : > { %v502_v29 = vadd.f32 %v500_v27, %v495_v28 }
 0x17a   : > { %v503_v30 = vpack.c.bf16 %v502_v29, %v502_v29 }
 0x17c   : > { %1510 = vmatmul.mubr.msk.bf16.vlgmr.msra.gmra.mrb[0].mxu0 %vm474_vm0, %v503_v30  ;;  %1518 = vmatmul.mubr.msk.bf16.vlgmr.msra.gmra.mrb[0].mxu1 %vm474_vm0, %v503_v30 }
 0x24f   : > { %v557_v31 = vpop.f32.mrb[0].mxu0  ;;  %v614_v32 = vpop.f32.mrb[0].mxu1 }
 0x250   : > { %v563_v33 = vpack.c.bf16 %v557_v31, %v557_v31  ;;  %v620_v34 = vpack.c.bf16 %v614_v32, %v614_v32  ;;  %v1511_v35 = vpop.f32.mrb[1].mxu0  ;;  %v1519_v36 = vpop.f32.mrb[1].mxu1 }
 0x251   : > { %v560_v37 = vpop.f32.mrb[2].mxu0  ;;  %v617_v38 = vpop.f32.mrb[2].mxu1 }
 0x252   : > { %622 = vst.msk [vmem:[#allocation2] sm:$0xf] %vm621_vm2, %v563_v33  ;;  %623 = vst.msk [vmem:[#allocation3] sm:$0xf] %vm621_vm2, %v620_v34  ;;  %v1520_v39 = vpop.f32.mrb[3].mxu1  ;;  %640 = vrot.lane.b32.xlu0 %v563_v33, %s1827_s23  ;;  %627 = vrot.lane.b32.xlu1 %v563_v33, %s1828_s27  ;;  %v1512_v40 = vpop.f32.mrb[3].mxu0 }
 0x256   : > { %635 = vrot.lane.b32.xlu1 %v620_v34, %s1828_s27 }
 0x25a   : > { %645 = vrot.lane.b32.xlu1 %v620_v34, %s1827_s23 }
 0x25e   : > { %650 = vrot.lane.b32.xlu1 %v563_v33, %s1829_s28 }
 0x262   : > { %655 = vrot.lane.b32.xlu1 %v620_v34, %s1829_s28 }
 0x2c4   : > { %v641_v41 = vpop.permute.xlu0 %640  ;;  %v628_v42 = vpop.permute.xlu1 %627 }
 0x2c5   : > { %644 = vst.msk [vmem:[#allocation2 + $0x8] sm:$0xf] %vm621_vm2, %v641_v41  ;;  %631 = vst.msk [vmem:[#allocation2 + $0x4] sm:$0xf] %vm621_vm2, %v628_v42 }
 0x2c8   : > { %v636_v43 = vpop.permute.xlu1 %635 }
 0x2c9   : > { %639 = vst.msk [vmem:[#allocation3 + $0x4] sm:$0xf] %vm621_vm2, %v636_v43 }
 0x2cc   : > { %v646_v44 = vpop.permute.xlu1 %645 }
 0x2cd   : > { %649 = vst.msk [vmem:[#allocation3 + $0x8] sm:$0xf] %vm621_vm2, %v646_v44 }
 0x2d0   : > { %v651_v45 = vpop.permute.xlu1 %650 }
 0x2d1   : > { %654 = vst.msk [vmem:[#allocation2 + $0xc] sm:$0xf] %vm621_vm2, %v651_v45 }
 0x2d4   : > { %v656_v46 = vpop.permute.xlu1 %655 }
 0x2d5   : > { %659 = vst.msk [vmem:[#allocation3 + $0xc] sm:$0xf] %vm621_vm2, %v656_v46 }
 0x2d6 PF: > { %v660_v47 = vld [vmem:[%s2020_s29] sm:$0xff]  ;;  %vm661_vm3 = vcmask 261120   ;;  %v1830_v55 = vmov 0.0   ;;  %vm1831_vm4 = vmmov 0   ;;  %v1692_v56 = vld [vmem:[%s2215_s5 + $0x8] sm:$0xff]   ;;  %v677_v59 = vlaneseq  ;;  %s1832_s21 = smov 104  }
 0x2d7   : > { %v662_v48 = vsel %vm661_vm3, %v660_v47, 0.0  ;;  %v1691_v54 = vld [vmem:[%s2215_s5] sm:$0xff]   ;;  %1521 = vmatprep.subr.bf16.mxu0 %v1830_v55  ;;  %1525 = vmatprep.mubr.msk.bf16.mxu0 %vm1831_vm4, %v1830_v55  ;;  %vm787_vm5 = vcmask 64512   ;;  %vm751_vm6 = vcmask 60416   ;;  %s1833_s26 = smov 120   ;;  %s1834_s3 = smov 112  }
 0x2d8   : > { %663 = vadd.xlane.f32.xlu0 %v662_v48  ;;  %1522 = vmatpush3.bf16.msra.mxu0 %v1691_v54  ;;  %v678_v61 = vshrl.u32 %v677_v59, 7  ;;  %v775_v8 = vld [vmem:[#allocation2] sm:$0xf]  ;;  %v777_v15 = vld [vmem:[#allocation2 + $0x8] sm:$0xf]  ;;  %v783_v26 = vld [vmem:[%s2022_s10] sm:$0xff] }
 0x2d9   : > { %1529 = vmatprep.subr.bf16.mxu1 %v1830_v55  ;;  %1523 = vmatprep.subr.bf16.mxu0 %v1830_v55  ;;  %v792_v9 = vsel %vm787_vm5, %v775_v8, 0  ;;  %v884_v16 = vsel %vm787_vm5, %v777_v15, 0  ;;  %v778_v21 = vld [vmem:[#allocation2 + $0xc] sm:$0xf]  ;;  %v779_v33 = vld [vmem:[#allocation3] sm:$0xf] }
 0x2da   : > { %1531 = vmatprep.mubr.msk.bf16.mxu1 %vm1831_vm4, %v1830_v55  ;;  %v679_v62 = vsub.s32 0, %v678_v61  ;;  %1530 = vmatpush3.bf16.xpose.msra.mxu1 %v792_v9  ;;  %v930_v22 = vsel %vm787_vm5, %v778_v21, 0  ;;  %vm1015_vm7 = vcmask 1043456   ;;  %v784_v35 = vld [vmem:[%s2022_s10 + $0x8] sm:$0xff]  ;;  %v785_v40 = vld [vmem:[%s2022_s10 + $0x10] sm:$0xff]  ;;  %s2245_s24 = sld [smem:[#allocation18_spill]] }
 0x2db   : > { %1541 = vmatprep.subr.bf16.mxu1 %v1830_v55  ;;  %v1017_v34 = vsel %vm1015_vm7, %v779_v33, 0  ;;  %s1835_s27 = smov 8   ;;  %s1836_s28 = smov 16   ;;  %vm1216_vm8 = vcmask 126016   ;;  %vm1224_vm9 = vcmask 191616   ;;  %vm1232_vm10 = vcmask 257216  }
 0x2dc   : > { %1524 = vmatpush3.bf16.msra.mxu0 %v1692_v56  ;;  %v680_v63 = vrot.slane %v1999_v4, %v679_v62  ;;  %v687_v2 = vrot.slane %v2004_v5, %v679_v62  ;;  %v776_v4 = vld [vmem:[#allocation2 + $0x4] sm:$0xf]  ;;  %v781_v62 = vld [vmem:[#allocation3 + $0x8] sm:$0xf]  ;;  %s1837_s12 = smov 24   ;;  %s1467_s2 = sshll.u32 %s1811_s19, 1 }
 0x2dd   : > { %1535 = vmatprep.subr.bf16.mxu0 %v1830_v55  ;;  %v838_v10 = vsel %vm787_vm5, %v776_v4, 0  ;;  %s1314_s29 = sadd.s32 %s1807_s18, %s1467_s2  ;;  %s2247_s23 = sld [smem:[#allocation20_spill]] }
 0x2de   : > { %s2248_s18 = sand.u32 1, %s1791_s14  }
 0x2df   : > { %s1303_s19 = scalar_lea.sflag [#allocation8], %s2248_s18 }
 0x365   : > { %v664_v49 = vpop.xlane.xlu0 %663 }
 0x366   : > { %v666_v50 = vmul.f32 0.03125, %v664_v49 }
 0x368   : > { %v667_v51 = vsub.f32 %v660_v47, %v666_v50  ;;  %v786_v47 = vld [vmem:[%s2022_s10 + $0x18] sm:$0xff]  ;;  %s1318_s10 = sshll.u32 %s453_s4, 4  ;;  %s2148_s10 = int_to_ptr.vmem [resolvable:$true] %s1318_s10 }
 0x36a   : > { %v668_v52 = vmul.f32 %v667_v51, %v667_v51 }
 0x36c   : > { %v669_v53 = vsel %vm661_vm3, %v668_v52, 0.0 }
 0x36d   : > { %670 = vadd.xlane.f32.xlu0 %v669_v53 }
 0x3fa   : > { %v671_v57 = vpop.xlane.xlu0 %670 }
 0x3fb   : > { %v672_v58 = vmul.f32 0.03125, %v671_v57 }
 0x3fd   : > { %v673_v60 = vadd.f32 1e-05, %v672_v58  ;;  %v780_v58 = vld [vmem:[#allocation3 + $0x4] sm:$0xf] }
 0x3ff   : > { %1695 = vrsqrt.f32 %v673_v60  ;;  %v1063_v60 = vsel %vm1015_vm7, %v780_v58, 0 }
 0x409   : > { %v1696_v0 = vpop.eup %1695 }
 0x40a   : > { %v675_v1 = vmul.f32 %v1696_v0, %v667_v51 }
 0x40c   : > { %v682_v3 = vmul.f32 %v680_v63, %v675_v1 }
 0x40e   : > { %v689_v6 = vadd.f32 %v687_v2, %v682_v3  ;;  %v1109_v2 = vsel %vm1015_vm7, %v781_v62, 0 }
 0x410   : > { %v690_v7 = vpack.c.bf16 %v689_v6, %v689_v6 }
 0x412   : > { %1526 = vmatmul.mubr.msk.bf16.vlgmr.msra.gmra.mrb[0].mxu0 %vm661_vm3, %v690_v7 }
 0x413   : > { %1537 = vmatprep.mubr.msk.bf16.mxu0 %vm1831_vm4, %v1830_v55  ;;  %1536 = vmatpush3.bf16.xpose.msra.mxu0 %v838_v10 }
 0x414   : > { %1547 = vmatprep.subr.bf16.mxu0 %v1830_v55 }
 0x4e5   : > { %v744_v5 = vpop.f32.mrb[0].mxu0 }
 0x4e6   : > { %v750_v11 = vpack.c.bf16 %v744_v5, %v744_v5  ;;  %v1527_v12 = vpop.f32.mrb[1].mxu0 }
 0x4e7   : > { %v747_v13 = vpop.f32.mrb[2].mxu0  ;;  %v782_v12 = vld [vmem:[#allocation3 + $0xc] sm:$0xf] }
 0x4e8   : > { %752 = vst.msk [vmem:[#allocation4] sm:$0xf] %vm751_vm6, %v750_v11  ;;  %766 = vrot.lane.b32.xlu0 %v750_v11, %s1832_s21  ;;  %756 = vrot.lane.b32.xlu1 %v750_v11, %s1833_s26  ;;  %v1528_v14 = vpop.f32.mrb[3].mxu0  ;;  %s2246_s26 = sld [smem:[#allocation19_spill]] }
 0x4ec   : > { %761 = vrot.lane.b32.xlu1 %v750_v11, %s1834_s3  ;;  %s1468_s3 = sshll.u32 %s1314_s29, 7 }
 0x4ef   : > { %v771_v17 = vld [vmem:[#allocation4] sm:$0xf] }
 0x4f0   : > { %1532 = vmatmul.mubr.msk.bf16.vlgmr.msra.gmra.mrb[0].mxu1 %vm787_vm5, %v771_v17 }
 0x4f1   : > { %1542 = vmatpush3.bf16.xpose.msra.mxu1 %v884_v16  ;;  %1543 = vmatprep.mubr.msk.bf16.mxu1 %vm1831_vm4, %v1830_v55  ;;  %v1155_v16 = vsel %vm1015_vm7, %v782_v12, 0 }
 0x4f2   : > { %1553 = vmatprep.subr.bf16.mxu1 %v1830_v55 }
 0x55a   : > { %v767_v18 = vpop.permute.xlu0 %766  ;;  %v757_v19 = vpop.permute.xlu1 %756 }
 0x55b   : > { %770 = vst.msk [vmem:[#allocation4 + $0xc] sm:$0xf] %vm751_vm6, %v767_v18  ;;  %760 = vst.msk [vmem:[#allocation4 + $0x4] sm:$0xf] %vm751_vm6, %v757_v19 }
 0x55e   : > { %v762_v20 = vpop.permute.xlu1 %761 }
 0x55f   : > { %765 = vst.msk [vmem:[#allocation4 + $0x8] sm:$0xf] %vm751_vm6, %v762_v20 }
 0x562   : > { %v772_v23 = vld [vmem:[#allocation4 + $0x4] sm:$0xf]  ;;  %v774_v25 = vld [vmem:[#allocation4 + $0xc] sm:$0xf] }
 0x563   : > { %1538 = vmatmul.mubr.msk.bf16.vlgmr.msra.gmra.mrb[4].mxu0 %vm787_vm5, %v772_v23 }
 0x564   : > { %1548 = vmatpush3.bf16.xpose.msra.mxu0 %v930_v22  ;;  %1549 = vmatprep.mubr.msk.bf16.mxu0 %vm1831_vm4, %v1830_v55 }
 0x565   : > { %1559 = vmatprep.subr.bf16.mxu0 %v1830_v55 }
 0x566   : > { %v773_v24 = vld [vmem:[#allocation4 + $0x8] sm:$0xf] }
 0x567   : > { %1544 = vmatmul.mubr.msk.bf16.vlgmr.msra.gmra.mrb[4].mxu1 %vm787_vm5, %v773_v24 }
 0x568   : > { %1555 = vmatprep.mubr.msk.bf16.mxu1 %vm1831_vm4, %v1830_v55  ;;  %1554 = vmatpush3.bf16.msra.mxu1 %v1017_v34  ;;  %v1693_v34 = vld [vmem:[%s2245_s24] sm:$0xff]  }
 0x569   : > { %1565 = vmatprep.subr.bf16.mxu1 %v1830_v55 }
 0x56b   : > { %1550 = vmatmul.mubr.msk.bf16.vlgmr.msra.gmra.mrb[8].mxu0 %vm787_vm5, %v774_v25 }
 0x56c   : > { %1561 = vmatprep.mubr.msk.bf16.mxu0 %vm1831_vm4, %v1830_v55  ;;  %1560 = vmatpush3.bf16.msra.mxu0 %v1063_v60 }
 0x56d   : > { %1571 = vmatprep.subr.bf16.mxu0 %v1830_v55 }
 0x5c3   : > { %v828_v27 = vpop.f32.mrb[0].mxu1 }
 0x5c4   : > { %v829_v28 = vadd.f32 %v828_v27, %v783_v26  ;;  %v1533_v29 = vpop.f32.mrb[1].mxu1 }
 0x5c5   : > { %v831_v30 = vpop.f32.mrb[2].mxu1 }
 0x5c6   : > { %v1534_v31 = vpop.f32.mrb[3].mxu1  ;;  %v972_v32 = vsel %vm787_vm5, %v829_v28, -inf }
 0x5c7   : > { %973 = vmax.xlane.f32.xlu1 %v972_v32 }
 0x636   : > { %v874_v36 = vpop.f32.mrb[4].mxu0 }
 0x637   : > { %v875_v37 = vadd.f32 %v874_v36, %v784_v35  ;;  %v1539_v38 = vpop.f32.mrb[5].mxu0 }
 0x638   : > { %v877_v39 = vpop.f32.mrb[6].mxu0 }
 0x639   : > { %v1540_v41 = vpop.f32.mrb[7].mxu0  ;;  %v975_v42 = vsel %vm787_vm5, %v875_v37, -inf  ;;  %v1694_v39 = vld [vmem:[%s2245_s24 + $0x8] sm:$0xff]  }
 0x63a   : > { %v920_v43 = vpop.f32.mrb[4].mxu1  ;;  %976 = vmax.xlane.f32.xlu0 %v975_v42 }
 0x63b   : > { %v921_v44 = vadd.f32 %v920_v43, %v785_v40  ;;  %v1545_v45 = vpop.f32.mrb[5].mxu1 }
 0x63c   : > { %v923_v46 = vpop.f32.mrb[6].mxu1 }
 0x63d   : > { %v1546_v48 = vpop.f32.mrb[7].mxu1  ;;  %v978_v49 = vsel %vm787_vm5, %v921_v44, -inf }
 0x63e   : > { %979 = vmax.xlane.f32.xlu1 %v978_v49  ;;  %v966_v50 = vpop.f32.mrb[8].mxu0 }
 0x63f   : > { %v967_v51 = vadd.f32 %v966_v50, %v786_v47  ;;  %v1551_v52 = vpop.f32.mrb[9].mxu0 }
 0x640   : > { %v969_v53 = vpop.f32.mrb[10].mxu0 }
 0x641   : > { %v1552_v54 = vpop.f32.mrb[11].mxu0  ;;  %v981_v56 = vsel %vm787_vm5, %v967_v51, -inf }
 0x642   : > { %982 = vmax.xlane.f32.xlu1 %v981_v56 }
 0x654   : > { %v974_v57 = vpop.xlane.xlu1 %973 }
 0x655   : > { %v984_v59 = vsub.f32 %v829_v28, %v974_v57 }
 0x657   : > { %v988_v61 = vmul.f32 1.442695, %v984_v59 }
 0x659   : > { %1697 = vpow2.f32 %v988_v61  ;;  %v1462_v61 = vld [vmem:[%s2246_s26] ss:$0 sm:$0xff] }
 0x663   : > { %v1698_v63 = vpop.eup %1697 }
 0x664   : > { %v996_v0 = vsel %vm787_vm5, %v1698_v63, 0.0  ;;  %v1008_v1 = vpack.c.bf16 %v1698_v63, %v1698_v63 }
 0x665   : > { %997 = vadd.xlane.f32.xlu0 %v996_v0 }
 0x666   : > { %1556 = vmatmul.mubr.msk.bf16.vlgmr.msra.gmra.mrb[8].mxu1 %vm787_vm5, %v1008_v1 }
 0x667   : > { %1566 = vmatpush3.bf16.msra.mxu1 %v1109_v2  ;;  %1567 = vmatprep.mubr.msk.bf16.mxu1 %vm1831_vm4, %v1830_v55 }
 0x668   : > { %1577 = vmatprep.subr.bf16.mxu1 %v1830_v55 }
 0x6c7   : > { %v977_v3 = vpop.xlane.xlu0 %976 }
 0x6c8   : > { %v985_v6 = vsub.f32 %v875_v37, %v977_v3 }
 0x6ca   : > { %v990_v7 = vmul.f32 1.442695, %v985_v6 }
 0x6cb   : > { %v980_v8 = vpop.xlane.xlu1 %979 }
 0x6cc   : > { %1699 = vpow2.f32 %v990_v7  ;;  %v986_v9 = vsub.f32 %v921_v44, %v980_v8 }
 0x6ce   : > { %v992_v4 = vmul.f32 1.442695, %v986_v9 }
 0x6cf   : > { %v983_v10 = vpop.xlane.xlu1 %982 }
 0x6d0   : > { %1701 = vpow2.f32 %v992_v4  ;;  %v987_v5 = vsub.f32 %v967_v51, %v983_v10 }
 0x6d2   : > { %v994_v11 = vmul.f32 1.442695, %v987_v5 }
 0x6d4   : > { %1703 = vpow2.f32 %v994_v11 }
 0x6d6   : > { %v1700_v13 = vpop.eup %1699 }
 0x6d7   : > { %v999_v14 = vsel %vm787_vm5, %v1700_v13, 0.0  ;;  %v1009_v15 = vpack.c.bf16 %v1700_v13, %v1700_v13 }
 0x6d8   : > { %1000 = vadd.xlane.f32.xlu1 %v999_v14 }
 0x6d9   : > { %1562 = vmatmul.mubr.msk.bf16.vlgmr.msra.gmra.mrb[12].mxu0 %vm787_vm5, %v1009_v15 }
 0x6da   : > { %v1702_v17 = vpop.eup %1701  ;;  %1572 = vmatpush3.bf16.msra.mxu0 %v1155_v16  ;;  %1573 = vmatprep.mubr.msk.bf16.mxu0 %vm1831_vm4, %v1830_v55 }
 0x6db   : > { %v1002_v18 = vsel %vm787_vm5, %v1702_v17, 0.0  ;;  %v1010_v19 = vpack.c.bf16 %v1702_v17, %v1702_v17 }
 0x6dc   : > { %1003 = vadd.xlane.f32.xlu1 %v1002_v18 }
 0x6dd   : > { %1568 = vmatmul.mubr.msk.bf16.vlgmr.msra.gmra.mrb[12].mxu1 %vm787_vm5, %v1010_v19 }
 0x6de   : > { %v1704_v20 = vpop.eup %1703  ;;  %1581 = vmatprep.mubr.msk.bf16.mxu1 %vm1831_vm4, %v1830_v55  ;;  %1578 = vmatpush3.bf16.msra.mxu1 %v1693_v34 }
 0x6df   : > { %v1005_v21 = vsel %vm787_vm5, %v1704_v20, 0.0  ;;  %v1011_v22 = vpack.c.bf16 %v1704_v20, %v1704_v20  ;;  %1579 = vmatprep.subr.bf16.mxu1 %v1830_v55 }
 0x6e0   : > { %1006 = vadd.xlane.f32.xlu1 %v1005_v21 }
 0x6e1   : > { %1574 = vmatmul.mubr.msk.bf16.vlgmr.msra.gmra.mrb[16].mxu0 %vm787_vm5, %v1011_v22 }
 0x6e2   : > { %1580 = vmatpush3.bf16.msra.mxu1 %v1694_v39 }
 0x6f2   : > { %v998_v23 = vpop.xlane.xlu0 %997 }
 0x6f3   : > { %1705 = vrcp.f32 %v998_v23 }
 0x6fd   : > { %v1706_v24 = vpop.eup %1705 }
 0x739   : > { %v1053_v25 = vpop.f32.mrb[8].mxu1 }
 0x73a   : > { %v1198_v26 = vmul.f32 %v1706_v24, %v1053_v25  ;;  %v1557_v27 = vpop.f32.mrb[9].mxu1 }
 0x73b   : > { %v1056_v28 = vpop.f32.mrb[10].mxu1 }
 0x73c   : > { %v1205_v29 = vpack.c.bf16 %v1198_v26, %v1198_v26  ;;  %v1558_v30 = vpop.f32.mrb[11].mxu1 }
 0x73e   : > { %1209 = vst.msk [vmem:[#allocation5] sm:$0xf] %vm751_vm6, %v1205_v29 }
 0x765   : > { %v1001_v31 = vpop.xlane.xlu1 %1000 }
 0x766   : > { %1707 = vrcp.f32 %v1001_v31 }
 0x769   : > { %v1004_v32 = vpop.xlane.xlu1 %1003 }
 0x76a   : > { %1709 = vrcp.f32 %v1004_v32 }
 0x76d   : > { %v1007_v33 = vpop.xlane.xlu1 %1006 }
 0x76e   : > { %1711 = vrcp.f32 %v1007_v33 }
 0x770   : > { %v1708_v35 = vpop.eup %1707 }
 0x774   : > { %v1710_v43 = vpop.eup %1709 }
 0x778   : > { %v1712_v50 = vpop.eup %1711 }
 0x7ac   : > { %v1099_v36 = vpop.f32.mrb[12].mxu0 }
 0x7ad   : > { %v1200_v37 = vmul.f32 %v1708_v35, %v1099_v36  ;;  %v1563_v38 = vpop.f32.mrb[13].mxu0 }
 0x7ae   : > { %v1102_v40 = vpop.f32.mrb[14].mxu0 }
 0x7af   : > { %v1474_v41 = vpack.c.bf16 %v1200_v37, %v1200_v37  ;;  %v1564_v42 = vpop.f32.mrb[15].mxu0 }
 0x7b0   : > { %v1145_v44 = vpop.f32.mrb[12].mxu1 }
 0x7b1   : > { %v1202_v45 = vmul.f32 %v1710_v43, %v1145_v44  ;;  %v1569_v46 = vpop.f32.mrb[13].mxu1  ;;  %1213 = vrot.lane.b32.xlu1 %v1474_v41, %s1835_s27  ;;  %s2146_s27 = scalar_lea.hbm %s2247_s23, %s1468_s3 }
 0x7b2   : > { %v1148_v47 = vpop.f32.mrb[14].mxu1 }
 0x7b3   : > { %v1475_v48 = vpack.c.bf16 %v1202_v45, %v1202_v45  ;;  %v1570_v49 = vpop.f32.mrb[15].mxu1 }
 0x7b4   : > { %v1191_v51 = vpop.f32.mrb[16].mxu0 }
 0x7b5   : > { %v1204_v52 = vmul.f32 %v1712_v50, %v1191_v51  ;;  %1221 = vrot.lane.b32.xlu0 %v1475_v48, %s1836_s28  ;;  %v1575_v53 = vpop.f32.mrb[17].mxu0  ;;  %s1713_s28 = scalar_lea.vmem %s2148_s10, 128 }
 0x7b6   : > { %v1194_v54 = vpop.f32.mrb[18].mxu0  ;;  %p1714_p6 = scmp.ne.s32.totalorder %s2148_s10, %s1713_s28 }
 0x7b7   : > { %v1476_v55 = vpack.c.bf16 %v1204_v52, %v1204_v52  ;;  %v1576_v56 = vpop.f32.mrb[19].mxu0 }
 0x7b8   : > { %p1715_p7 = pnand %p1714_p6, %p1973_p10 }
 0x7b9   : > { %1229 = vrot.lane.b32.xlu1 %v1476_v55, %s1837_s12  ;;  %s1838_s12 = smov [#allocation7]  }
 0x7ba   : > { %p1716_p8 = pneg %p1715_p7  ;;  %s1717_s2 = sshll.u32 %s1838_s12, 4  ;;  %s1718_s2 = int_to_ptr.vmem [resolvable:$false] %s1717_s2 }
 0x7bb   : > { %s1719_s29 = scalar_lea.vmem %s1718_s2, 256  ;;  %p1720_p9 = scmp.lt.s32.totalorder %s2148_s10, %s1718_s2 }
 0x7bc   : > { %p1721_p11 = scmp.lt.s32.totalorder %s1719_s29, %s1713_s28 }
 0x7be   : > { %p1722_p13 = por %p1721_p11, %p1720_p9 }
 0x7c0   : > { %p1723_p0 = pnand %p1722_p13, %p1716_p8 }
 0x823   : > { %v1214_v57 = vpop.permute.xlu1 %1213 }
 0x824   : > { %1217 = vst.msk [vmem:[#allocation5] sm:$0xf] %vm1216_vm8, %v1214_v57 }
 0x827   : > { %v1222_v58 = vpop.permute.xlu0 %1221 }
 0x828   : > { %1225 = vst.msk [vmem:[#allocation5] sm:$0xf] %vm1224_vm9, %v1222_v58 }
 0x82b   : > { %v1230_v59 = vpop.permute.xlu1 %1229 }
 0x82c   : > { %1233 = vst.msk [vmem:[#allocation5] sm:$0xf] %vm1232_vm10, %v1230_v59 }
 0x833   : > { %v1234_v60 = vld [vmem:[#allocation5] sm:$0xf] }
 0x834   : > { %1582 = vmatmul.mubr.msk.bf16.vlgmr.msra.gmra.mrb[16].mxu1 %vm661_vm3, %v1234_v60 }
 0x907   : > { %v1295_v62 = vpop.f32.mrb[16].mxu1 }
 0x908   : > { %v1296_v63 = vadd.f32 %v1462_v61, %v1295_v62  ;;  %v1583_v0 = vpop.f32.mrb[17].mxu1 }
 0x909   : > { %v1298_v1 = vpop.f32.mrb[18].mxu1 }
 0x90a   : > { %1301 = vst.msk [vmem:[%s453_s4] sm:$0xff] %vm661_vm3, %v1296_v63  ;;  %v1584_v2 = vpop.f32.mrb[19].mxu1 }
 0x90b   : > { %1726 = shalt.err (!%p1723_p0)
}
 0x90c   : > { %s1727_s4 = scalar_lea.hbm %s2146_s27, 128  ;;  %s1731_s21 = scalar_lea.hbm %s2247_s23, 512 }
 0x90d   : > { %p1728_p1 = scmp.ne.s32.totalorder %s2146_s27, %s1727_s4  ;;  %p1732_p4 = scmp.lt.u32.totalorder %s2146_s27, %s2247_s23 }
 0x90e   : > { %p1733_p5 = scmp.lt.u32.totalorder %s1731_s21, %s1727_s4  ;;  %p1735_p7 = scmp.lt.u32.totalorder %s1727_s4, %s2146_s27 }
 0x90f   : > { %p1729_p2 = pnand %p1728_p1, %p1973_p10 }
 0x910   : > { %p1734_p6 = por %p1733_p5, %p1732_p4 }
 0x911   : > { %p1730_p3 = pneg %p1729_p2 }
 0x912   : > { %p1736_p8 = por %p1735_p7, %p1734_p6 }
 0x914   : > { %p1737_p9 = pnand %p1736_p8, %p1730_p3 }
 0x916   : > { %1740 = shalt.err (!%p1737_p9)
}
 0x917   : > { %1585 = dma.vmem_to_hbm [thread:$0]  (%p1973_p10), %s2148_s10, 128, %s2146_s27, %s1303_s19  }
 0x918 PF: > { %p1591_p11 = scmp.ge.s32.totalorder %s1823_s22, 2  ;;  %s1330_s11 = sand.u32 1, %s1787_s13  }
 0x919   : > { %s1331_s16 = scalar_lea.sflag [#allocation8], %s1330_s11 }
 0x91a   : > { %p1588_p13 = pnand %p1591_p11, %p1980_p12 }
 0x91c   : > { %1782 = dma.done.wait (!%p1588_p13), %s1331_s16, 128  }
 0x91d   : > { %1784 = vsyncadd (!%p1588_p13), %s1331_s16, 4294967168  ;;  %s23_s22 = sadd.s32 1, %s1823_s22   ;;  %s2249_s25 = sld [smem:[#allocation14_spill]] }
 0x91e   : > { %p20_p0 = scmp.ge.s32.totalorder %s23_s22, 6   ;;  %s2250_s18 = sld [smem:[#allocation10_spill]] }
 0x91f   : > { %s2251_s19 = sld [smem:[#allocation11_spill]]  ;;  %s2252_s20 = sld [smem:[#allocation12_spill]] }
 0x920   : > { %s2253_s21 = sld [smem:[#allocation13_spill]]  ;;  %s2254_s13 = smov %s1791_s14 }
 0x921   : > { %s2255_s14 = smov %s1795_s15  ;;  %s2256_s15 = smov %s1978_s9 }
 0x922   : > { %s2257_s16 = smov %s1803_s17  ;;  %22 = sbr.rel (!%p20_p0) target bundleno = 13 (0xd), region = 157 }
 0x923   : > { %s2258_s17 = smov %s2249_s25 }
 0x929   :  { %1336 = vsyncpa [#allocation8], 1 }
 0x92a   :  { %1338 = vsyncpa [#allocation8 + $0x1], 1 }

</bundles_post_ra>
